<compile_context>
chip_gen: v7x
topology: tpu7x:2x2x1
jax: 0.10.0
libtpu: 0.0.40
codegen_flags: <defaults>
</compile_context>

<pallas_src>
import jax
import jax.numpy as jnp
from jax.experimental import pallas as pl
from jax.experimental.pallas import tpu as pltpu


# ----------------------------------------------------------------------------
# digamma (x > 0, f32): shift-by-4 recurrence (2 paired 1/x terms) + asymptotic
# series through z^-8.  Divisions use approx reciprocal + one Newton-Raphson
# step (refinement runs on the VPU, keeping the single EUP slot for the recip
# and the log).  Abs error ~1e-7 for x >= 0.01, far inside the 1e-4 tolerance.
# ----------------------------------------------------------------------------
def _recip(d):
    r = pl.reciprocal(d, approx=True)
    return r * (2.0 - d * r)          # one Newton-Raphson step (VPU)


def _digamma(x):
    acc = jnp.zeros_like(x)
    z = x
    for _ in range(2):                 # paired terms: 1/z + 1/(z+1) = (2z+1)/(z(z+1))
        zp1 = z + 1.0
        acc = acc + (z + zp1) * _recip(z * zp1)
        z = zp1 + 1.0                  # z -> x + 4 after the loop
    inv = _recip(z)
    inv2 = inv * inv
    # psi(z) ~ ln z - 1/(2z) - 1/(12 z^2) + 1/(120 z^4) - 1/(252 z^6) + 1/(240 z^8)
    series = jnp.log(z) - 0.5 * inv - inv2 * (
        (1.0 / 12.0)
        - inv2 * ((1.0 / 120.0)
                  - inv2 * ((1.0 / 252.0) - inv2 * (1.0 / 240.0))))
    return series - acc


# ----------------------------------------------------------------------------
# Kernel factory.
# ----------------------------------------------------------------------------
def _make_kernel(num_pairs, b, c, t, hw, eps):
    rows = b * c                       # input rows per block (channel-minor)
    pb = num_pairs * b                 # packed S rows (all pairs)
    ragged = (hw % t) != 0             # static: last lane tile partially OOB

    def kernel(*refs):
        w_ref = refs[0]                                   # (rows, 1)
        data_refs = refs[1:1 + 2 * num_pairs]             # alternating alpha, y
        o_ref = refs[1 + 2 * num_pairs]                   # (1, t)
        acc_ref = refs[2 + 2 * num_pairs]                 # (max(rows, pb), t) scratch

        ni = pl.program_id(1)

        @pl.when(ni == 0)
        def _init():
            acc_ref[...] = jnp.zeros_like(acc_ref)

        w = w_ref[...].astype(jnp.float32)                # (rows, 1)

        if ragged:
            lane = jax.lax.broadcasted_iota(jnp.int32, (rows, t), 1)
            valid = (pl.program_id(0) * t + lane) < hw

        neg = None                                        # sum_pairs yw * psi(alpha)
        s_parts = []                                      # per-batch S rows (1, t)
        yw_parts = []                                     # per-batch sum_c y*w rows

        for p in range(num_pairs):
            # Cast after the DMA so bf16 inputs stay bf16 on the wire.
            alpha = data_refs[2 * p][...].astype(jnp.float32)      # (rows, t)
            y = data_refs[2 * p + 1][...].astype(jnp.float32)      # (rows, t)
            if ragged:
                alpha = jnp.where(valid, alpha, 1.0)      # keep psi finite
                y = jnp.where(valid, y, 0.0)              # zero contribution
            yw = y * w
            contrib = yw * _digamma(alpha)                # full-occupancy EUP pass
            neg = contrib if neg is None else neg + contrib
            # Per-batch channel sums via cheap sublane-slice reduces (XLU has
            # slack during the EUP-bound digamma).  A tiny ones-matrix dot on
            # the idle MXU is an equivalent alternative.
            for bb in range(b):
                sl = slice(bb * c, (bb + 1) * c)
                s_parts.append(jnp.sum(alpha[sl, :], axis=0, keepdims=True))
                yw_parts.append(jnp.sum(yw[sl, :], axis=0, keepdims=True))

        s_all = s_parts[0] if len(s_parts) == 1 else jnp.concatenate(s_parts, axis=0)
        yw_all = yw_parts[0] if len(yw_parts) == 1 else jnp.concatenate(yw_parts, axis=0)
        dg_s = _digamma(s_all)                            # one packed pass for all S

        # Elementwise accumulation into the VMEM scratch (no per-step sublane
        # reduce, no 1-of-8-sublane RMW on the output ref).
        acc_ref[0:rows, :] = acc_ref[0:rows, :] - neg
        acc_ref[0:pb, :] = acc_ref[0:pb, :] + yw_all * (dg_s + eps)

        @pl.when(ni == pl.num_programs(1) - 1)
        def _finish():
            o_ref[...] = jnp.sum(acc_ref[...], axis=0, keepdims=True)

    return kernel


# ----------------------------------------------------------------------------
# Tiling heuristics.
# ----------------------------------------------------------------------------
def _vmem_budget_bytes():
    try:
        cap = int(getattr(pltpu.get_tpu_info(), "vmem_capacity_bytes", 0))
    except Exception:
        cap = 0
    if cap <= 0:
        cap = 64 * 1024 * 1024         # conservative (v7x physical)
    # ~half of physical VMEM (32 MiB on v7x, 64 MiB on v5e/v6e).
    return min(cap // 2, 64 * 1024 * 1024)


def _pick_batch_rows(nb, c):
    """Batch rows B per block: prefer full 8-sublane packing (B*C % 8 == 0)."""
    if nb * c <= 32:
        return nb                      # full batch extent (always a legal block)
    for cap in (32, 64, 128):
        hi = min(nb, max(cap // c, 0))
        for b in range(hi, 0, -1):
            if nb % b == 0 and (b * c) % 8 == 0:
                return b
    return nb                          # fallback: full extent


def _pick_hw_tile(hw, rows, num_pairs, budget_bytes):
    """Lane tile T: multiple of 128, sized against the VMEM budget."""
    if hw <= 128:
        return hw                      # full-extent block (always legal)
    # double-buffered inputs + accumulator scratch + ~4 live f32 intermediates
    bytes_per_lane = 4 * (2 * 2 * num_pairs * rows + rows + 4 * rows + 4)
    t = (budget_bytes // bytes_per_lane) // 128 * 128
    t = max(128, min(t, 32 * 1024))
    if t >= hw:
        # Keep >= 2 lane tiles so both v7x TensorCores get work; costs one
        # extra ~0.35us grid step on single-TC v5e/v6e (negligible).
        t = max(128, ((hw + 1) // 2 + 127) // 128 * 128)
    return t


# ----------------------------------------------------------------------------
# Wrapper: sum over (n, c, h, w) of  y * (psi(S) - psi(alpha) + eps) * w_c
# for one or two (alpha, y) pairs of identical shape, fused in one pallas_call.
# ----------------------------------------------------------------------------
def _uce_sum_pairs(pairs, weights, eps=1e-10):
    nb, c, h, w_ = pairs[0][0].shape
    hw = h * w_
    num_pairs = len(pairs)

    # Free, contiguous 2-D views (N*C, H*W): no extra HBM pass.
    flat = []
    for a, yv in pairs:
        flat.append(a.reshape(nb * c, hw))
        flat.append(yv.reshape(nb * c, hw))

    b = _pick_batch_rows(nb, c)
    rows = b * c
    pb = num_pairs * b
    rows_acc = max(rows, pb)
    budget = _vmem_budget_bytes()
    t = _pick_hw_tile(hw, rows, num_pairs, budget)
    n_hw = pl.cdiv(hw, t)
    n_batch = nb // b

    # Per-row weights (channel-minor layout): row r = bb*c + cc -> w[cc].
    w_rows = jnp.tile(jnp.asarray(weights, jnp.float32).reshape(-1), b).reshape(rows, 1)

    kernel = _make_kernel(num_pairs=num_pairs, b=b, c=c, t=t, hw=hw, eps=eps)

    data_specs = []
    for _ in range(num_pairs):
        data_specs += [pl.BlockSpec((rows, t), lambda hi, ni: (ni, hi)),
                       pl.BlockSpec((rows, t), lambda hi, ni: (ni, hi))]

    elems = num_pairs * nb * c * hw
    s_elems = num_pairs * nb * hw
    cost = pl.CostEstimate(
        flops=int((elems + s_elems) * 40),
        transcendentals=int((elems + s_elems) * 4),
        bytes_accessed=int(sum(x.size * x.dtype.itemsize for x in flat)
                           + hw * 4 + rows * 4),
    )

    partial = pl.pallas_call(
        kernel,
        out_shape=jax.ShapeDtypeStruct((1, hw), jnp.float32),
        grid=(n_hw, n_batch),                       # HW tiles (parallel), batch last
        in_specs=[pl.BlockSpec((rows, 1), lambda hi, ni: (0, 0))] + data_specs,
        out_specs=pl.BlockSpec((1, t), lambda hi, ni: (0, hi)),   # lane-dense store
        scratch_shapes=[pltpu.VMEM((rows_acc, t), jnp.float32)],  # resident accumulator
        compiler_params=pltpu.CompilerParams(
            dimension_semantics=("parallel", "arbitrary"),
            vmem_limit_bytes=int(budget),
        ),
        cost_estimate=cost,
    )(w_rows, *flat)

    return jnp.sum(partial)


def uce_loss_forward(alpha, y, alpha_s, y_s, weights):
    n, _, h, w_ = alpha.shape
    denom = jnp.float32(n * h * w_)
    if alpha_s is None:
        return _uce_sum_pairs([(alpha, y)], weights) / denom
    if alpha_s.shape == alpha.shape:
        # Fuse both loss terms into one pallas_call (extra in_specs, no HBM
        # concat); both means share the same N*H*W denominator so sums add.
        return _uce_sum_pairs([(alpha, y), (alpha_s, y_s)], weights) / denom
    ns, _, hs, ws = alpha_s.shape
    return (_uce_sum_pairs([(alpha, y)], weights) / denom
            + _uce_sum_pairs([(alpha_s, y_s)], weights) / jnp.float32(ns * hs * ws))


# ----------------------------------------------------------------------------
# Pure-JAX reference mirroring the PyTorch module.
# ----------------------------------------------------------------------------
def _reference_forward(alpha, y, alpha_s, y_s, weights):
    w = weights.reshape(1, -1, 1, 1)

    def loss(a, tgt):
        s = jnp.sum(a, axis=1, keepdims=True)
        dg = jax.scipy.special.digamma
        a_term = jnp.sum(tgt * (dg(s) - dg(a) + 1e-10) * w, axis=1, keepdims=True)
        return jnp.mean(a_term)

    k = loss(alpha, y)
    if alpha_s is None:
        return k
    return loss(alpha_s, y_s) + k


if __name__ == "__main__":
    key = jax.random.PRNGKey(0)
    k1, k2, k3, k4 = jax.random.split(key, 4)

    N, C, H, W = 2, 4, 16, 16

    # Deterministic "weights" parameter (the module's __init__ argument).
    weights = jnp.array([1.0, 0.5, 2.0, 1.5], dtype=jnp.float32)

    # Dirichlet concentration parameters (strictly positive) and soft labels.
    alpha = jax.random.uniform(k1, (N, C, H, W), jnp.float32, 0.5, 5.0)
    y = jax.nn.softmax(jax.random.normal(k2, (N, C, H, W), jnp.float32), axis=1)
    alpha_s = jax.random.uniform(k3, (N, C, H, W), jnp.float32, 0.5, 5.0)
    y_s = jax.nn.softmax(jax.random.normal(k4, (N, C, H, W), jnp.float32), axis=1)

    out = jax.jit(uce_loss_forward)(alpha, y, alpha_s, y_s, weights)
    out = jax.block_until_ready(out)

    ref = _reference_forward(alpha, y, alpha_s, y_s, weights)
    assert jnp.allclose(out, ref, rtol=1e-4, atol=1e-5), (out, ref)

    print("KERNEL_OK")
</pallas_src>

<mosaic_0001>
module attributes {stable_mosaic.version = 11 : i64} {
  func.func @kernel(%arg0: i32, %arg1: i32, %arg2: memref<8x1xf32, #tpu.memory_space<vmem>>, %arg3: memref<8x128xf32, #tpu.memory_space<vmem>>, %arg4: memref<8x128xf32, #tpu.memory_space<vmem>>, %arg5: memref<8x128xf32, #tpu.memory_space<vmem>>, %arg6: memref<8x128xf32, #tpu.memory_space<vmem>>, %arg7: memref<1x128xf32, #tpu.memory_space<vmem>>, %arg8: memref<8x128xf32, #tpu.memory_space<vmem>>) attributes {dimension_semantics = [#tpu.dimension_semantics<parallel>, #tpu.dimension_semantics<arbitrary>], iteration_bounds = array<i64: 2, 1>, scalar_prefetch = 0 : i64, scratch_operands = 1 : i64, tpu.core_type = #tpu.core_type<tc>, window_params = [{pipeline_mode = #tpu.pipeline_mode<synchronous>, transform_indices = @transform_0, window_bounds = array<i64: 8, 1>}, {transform_indices = @transform_1, window_bounds = array<i64: 8, 128>}, {transform_indices = @transform_2, window_bounds = array<i64: 8, 128>}, {transform_indices = @transform_3, window_bounds = array<i64: 8, 128>}, {transform_indices = @transform_4, window_bounds = array<i64: 8, 128>}, {transform_indices = @transform_5, window_bounds = array<i64: 1, 128>}]} {
    %c0_i32 = arith.constant 0 : i32
    %0 = arith.cmpi eq, %arg1, %c0_i32 : i32
    %1 = arith.extui %0 : i1 to i32
    %c0_i32_0 = arith.constant 0 : i32
    %2 = arith.cmpi ne, %1, %c0_i32_0 : i32
    scf.if %2 {
      %cst_67 = arith.constant 0.000000e+00 : f32
      %203 = vector.broadcast %cst_67 : f32 to vector<8x128xf32>
      %c0_68 = arith.constant 0 : index
      %c0_69 = arith.constant 0 : index
      %204 = vector.load %arg8[%c0_68, %c0_69] : memref<8x128xf32, #tpu.memory_space<vmem>>, vector<8x128xf32>
      tpu.vector_store %arg8[%c0_68, %c0_69], %203 {strides = array<i32>} : memref<8x128xf32, #tpu.memory_space<vmem>>, vector<8x128xf32>,
    } else {
    }
    %c0 = arith.constant 0 : index
    %c0_1 = arith.constant 0 : index
    %3 = vector.load %arg2[%c0, %c0_1] : memref<8x1xf32, #tpu.memory_space<vmem>>, vector<8x1xf32>
    %c0_2 = arith.constant 0 : index
    %c0_3 = arith.constant 0 : index
    %4 = vector.load %arg3[%c0_2, %c0_3] : memref<8x128xf32, #tpu.memory_space<vmem>>, vector<8x128xf32>
    %c0_4 = arith.constant 0 : index
    %c0_5 = arith.constant 0 : index
    %5 = vector.load %arg4[%c0_4, %c0_5] : memref<8x128xf32, #tpu.memory_space<vmem>>, vector<8x128xf32>
    %6 = vector.broadcast %3 : vector<8x1xf32> to vector<8x128xf32>
    %7 = arith.mulf %5, %6 : vector<8x128xf32>
    %cst = arith.constant 0.000000e+00 : f32
    %8 = vector.broadcast %cst : f32 to vector<8x128xf32>
    %cst_6 = arith.constant 1.000000e+00 : f32
    %9 = vector.broadcast %cst_6 : f32 to vector<8x128xf32>
    %10 = arith.addf %4, %9 : vector<8x128xf32>
    %11 = arith.addf %4, %10 : vector<8x128xf32>
    %12 = arith.mulf %4, %10 : vector<8x128xf32>
    %13 = tpu.reciprocal %12 {approx = true} : vector<8x128xf32> -> vector<8x128xf32>
    %14 = arith.mulf %12, %13 : vector<8x128xf32>
    %cst_7 = arith.constant 2.000000e+00 : f32
    %15 = vector.broadcast %cst_7 : f32 to vector<8x128xf32>
    %16 = arith.subf %15, %14 : vector<8x128xf32>
    %17 = arith.mulf %13, %16 : vector<8x128xf32>
    %18 = arith.mulf %11, %17 : vector<8x128xf32>
    %19 = arith.addf %8, %18 : vector<8x128xf32>
    %cst_8 = arith.constant 1.000000e+00 : f32
    %20 = vector.broadcast %cst_8 : f32 to vector<8x128xf32>
    %21 = arith.addf %10, %20 : vector<8x128xf32>
    %cst_9 = arith.constant 1.000000e+00 : f32
    %22 = vector.broadcast %cst_9 : f32 to vector<8x128xf32>
    %23 = arith.addf %21, %22 : vector<8x128xf32>
    %24 = arith.addf %21, %23 : vector<8x128xf32>
    %25 = arith.mulf %21, %23 : vector<8x128xf32>
    %26 = tpu.reciprocal %25 {approx = true} : vector<8x128xf32> -> vector<8x128xf32>
    %27 = arith.mulf %25, %26 : vector<8x128xf32>
    %cst_10 = arith.constant 2.000000e+00 : f32
    %28 = vector.broadcast %cst_10 : f32 to vector<8x128xf32>
    %29 = arith.subf %28, %27 : vector<8x128xf32>
    %30 = arith.mulf %26, %29 : vector<8x128xf32>
    %31 = arith.mulf %24, %30 : vector<8x128xf32>
    %32 = arith.addf %19, %31 : vector<8x128xf32>
    %cst_11 = arith.constant 1.000000e+00 : f32
    %33 = vector.broadcast %cst_11 : f32 to vector<8x128xf32>
    %34 = arith.addf %23, %33 : vector<8x128xf32>
    %35 = tpu.reciprocal %34 {approx = true} : vector<8x128xf32> -> vector<8x128xf32>
    %36 = arith.mulf %34, %35 : vector<8x128xf32>
    %cst_12 = arith.constant 2.000000e+00 : f32
    %37 = vector.broadcast %cst_12 : f32 to vector<8x128xf32>
    %38 = arith.subf %37, %36 : vector<8x128xf32>
    %39 = arith.mulf %35, %38 : vector<8x128xf32>
    %40 = arith.mulf %39, %39 : vector<8x128xf32>
    %41 = math.log %34 : vector<8x128xf32>
    %cst_13 = arith.constant 5.000000e-01 : f32
    %42 = vector.broadcast %cst_13 : f32 to vector<8x128xf32>
    %43 = arith.mulf %42, %39 : vector<8x128xf32>
    %44 = arith.subf %41, %43 : vector<8x128xf32>
    %cst_14 = arith.constant 0.00416666688 : f32
    %45 = vector.broadcast %cst_14 : f32 to vector<8x128xf32>
    %46 = arith.mulf %40, %45 : vector<8x128xf32>
    %cst_15 = arith.constant 0.0039682542 : f32
    %47 = vector.broadcast %cst_15 : f32 to vector<8x128xf32>
    %48 = arith.subf %47, %46 : vector<8x128xf32>
    %49 = arith.mulf %40, %48 : vector<8x128xf32>
    %cst_16 = arith.constant 0.00833333377 : f32
    %50 = vector.broadcast %cst_16 : f32 to vector<8x128xf32>
    %51 = arith.subf %50, %49 : vector<8x128xf32>
    %52 = arith.mulf %40, %51 : vector<8x128xf32>
    %cst_17 = arith.constant 0.0833333358 : f32
    %53 = vector.broadcast %cst_17 : f32 to vector<8x128xf32>
    %54 = arith.subf %53, %52 : vector<8x128xf32>
    %55 = arith.mulf %40, %54 : vector<8x128xf32>
    %56 = arith.subf %44, %55 : vector<8x128xf32>
    %57 = arith.subf %56, %32 : vector<8x128xf32>
    %58 = arith.mulf %7, %57 : vector<8x128xf32>
    %59 = vector.extract_strided_slice %4 {offsets = [0, 0], sizes = [4, 128], strides = [1, 1]} : vector<8x128xf32> to vector<4x128xf32>
    %cst_18 = arith.constant dense<0.000000e+00> : vector<128xf32>
    %60 = vector.multi_reduction <add>, %59, %cst_18 [0] : vector<4x128xf32> to vector<128xf32>
    %61 = vector.shape_cast %60 : vector<128xf32> to vector<1x128xf32>
    %62 = vector.extract_strided_slice %7 {offsets = [0, 0], sizes = [4, 128], strides = [1, 1]} : vector<8x128xf32> to vector<4x128xf32>
    %cst_19 = arith.constant dense<0.000000e+00> : vector<128xf32>
    %63 = vector.multi_reduction <add>, %62, %cst_19 [0] : vector<4x128xf32> to vector<128xf32>
    %64 = vector.shape_cast %63 : vector<128xf32> to vector<1x128xf32>
    %65 = vector.extract_strided_slice %4 {offsets = [4, 0], sizes = [4, 128], strides = [1, 1]} : vector<8x128xf32> to vector<4x128xf32>
    %cst_20 = arith.constant dense<0.000000e+00> : vector<128xf32>
    %66 = vector.multi_reduction <add>, %65, %cst_20 [0] : vector<4x128xf32> to vector<128xf32>
    %67 = vector.shape_cast %66 : vector<128xf32> to vector<1x128xf32>
    %68 = vector.extract_strided_slice %7 {offsets = [4, 0], sizes = [4, 128], strides = [1, 1]} : vector<8x128xf32> to vector<4x128xf32>
    %cst_21 = arith.constant dense<0.000000e+00> : vector<128xf32>
    %69 = vector.multi_reduction <add>, %68, %cst_21 [0] : vector<4x128xf32> to vector<128xf32>
    %70 = vector.shape_cast %69 : vector<128xf32> to vector<1x128xf32>
    %c0_22 = arith.constant 0 : index
    %c0_23 = arith.constant 0 : index
    %71 = vector.load %arg5[%c0_22, %c0_23] : memref<8x128xf32, #tpu.memory_space<vmem>>, vector<8x128xf32>
    %c0_24 = arith.constant 0 : index
    %c0_25 = arith.constant 0 : index
    %72 = vector.load %arg6[%c0_24, %c0_25] : memref<8x128xf32, #tpu.memory_space<vmem>>, vector<8x128xf32>
    %73 = vector.broadcast %3 : vector<8x1xf32> to vector<8x128xf32>
    %74 = arith.mulf %72, %73 : vector<8x128xf32>
    %cst_26 = arith.constant 0.000000e+00 : f32
    %75 = vector.broadcast %cst_26 : f32 to vector<8x128xf32>
    %cst_27 = arith.constant 1.000000e+00 : f32
    %76 = vector.broadcast %cst_27 : f32 to vector<8x128xf32>
    %77 = arith.addf %71, %76 : vector<8x128xf32>
    %78 = arith.addf %71, %77 : vector<8x128xf32>
    %79 = arith.mulf %71, %77 : vector<8x128xf32>
    %80 = tpu.reciprocal %79 {approx = true} : vector<8x128xf32> -> vector<8x128xf32>
    %81 = arith.mulf %79, %80 : vector<8x128xf32>
    %cst_28 = arith.constant 2.000000e+00 : f32
    %82 = vector.broadcast %cst_28 : f32 to vector<8x128xf32>
    %83 = arith.subf %82, %81 : vector<8x128xf32>
    %84 = arith.mulf %80, %83 : vector<8x128xf32>
    %85 = arith.mulf %78, %84 : vector<8x128xf32>
    %86 = arith.addf %75, %85 : vector<8x128xf32>
    %cst_29 = arith.constant 1.000000e+00 : f32
    %87 = vector.broadcast %cst_29 : f32 to vector<8x128xf32>
    %88 = arith.addf %77, %87 : vector<8x128xf32>
    %cst_30 = arith.constant 1.000000e+00 : f32
    %89 = vector.broadcast %cst_30 : f32 to vector<8x128xf32>
    %90 = arith.addf %88, %89 : vector<8x128xf32>
    %91 = arith.addf %88, %90 : vector<8x128xf32>
    %92 = arith.mulf %88, %90 : vector<8x128xf32>
    %93 = tpu.reciprocal %92 {approx = true} : vector<8x128xf32> -> vector<8x128xf32>
    %94 = arith.mulf %92, %93 : vector<8x128xf32>
    %cst_31 = arith.constant 2.000000e+00 : f32
    %95 = vector.broadcast %cst_31 : f32 to vector<8x128xf32>
    %96 = arith.subf %95, %94 : vector<8x128xf32>
    %97 = arith.mulf %93, %96 : vector<8x128xf32>
    %98 = arith.mulf %91, %97 : vector<8x128xf32>
    %99 = arith.addf %86, %98 : vector<8x128xf32>
    %cst_32 = arith.constant 1.000000e+00 : f32
    %100 = vector.broadcast %cst_32 : f32 to vector<8x128xf32>
    %101 = arith.addf %90, %100 : vector<8x128xf32>
    %102 = tpu.reciprocal %101 {approx = true} : vector<8x128xf32> -> vector<8x128xf32>
    %103 = arith.mulf %101, %102 : vector<8x128xf32>
    %cst_33 = arith.constant 2.000000e+00 : f32
    %104 = vector.broadcast %cst_33 : f32 to vector<8x128xf32>
    %105 = arith.subf %104, %103 : vector<8x128xf32>
    %106 = arith.mulf %102, %105 : vector<8x128xf32>
    %107 = arith.mulf %106, %106 : vector<8x128xf32>
    %108 = math.log %101 : vector<8x128xf32>
    %cst_34 = arith.constant 5.000000e-01 : f32
    %109 = vector.broadcast %cst_34 : f32 to vector<8x128xf32>
    %110 = arith.mulf %109, %106 : vector<8x128xf32>
    %111 = arith.subf %108, %110 : vector<8x128xf32>
    %cst_35 = arith.constant 0.00416666688 : f32
    %112 = vector.broadcast %cst_35 : f32 to vector<8x128xf32>
    %113 = arith.mulf %107, %112 : vector<8x128xf32>
    %cst_36 = arith.constant 0.0039682542 : f32
    %114 = vector.broadcast %cst_36 : f32 to vector<8x128xf32>
    %115 = arith.subf %114, %113 : vector<8x128xf32>
    %116 = arith.mulf %107, %115 : vector<8x128xf32>
    %cst_37 = arith.constant 0.00833333377 : f32
    %117 = vector.broadcast %cst_37 : f32 to vector<8x128xf32>
    %118 = arith.subf %117, %116 : vector<8x128xf32>
    %119 = arith.mulf %107, %118 : vector<8x128xf32>
    %cst_38 = arith.constant 0.0833333358 : f32
    %120 = vector.broadcast %cst_38 : f32 to vector<8x128xf32>
    %121 = arith.subf %120, %119 : vector<8x128xf32>
    %122 = arith.mulf %107, %121 : vector<8x128xf32>
    %123 = arith.subf %111, %122 : vector<8x128xf32>
    %124 = arith.subf %123, %99 : vector<8x128xf32>
    %125 = arith.mulf %74, %124 : vector<8x128xf32>
    %126 = arith.addf %58, %125 : vector<8x128xf32>
    %127 = vector.extract_strided_slice %71 {offsets = [0, 0], sizes = [4, 128], strides = [1, 1]} : vector<8x128xf32> to vector<4x128xf32>
    %cst_39 = arith.constant dense<0.000000e+00> : vector<128xf32>
    %128 = vector.multi_reduction <add>, %127, %cst_39 [0] : vector<4x128xf32> to vector<128xf32>
    %129 = vector.shape_cast %128 : vector<128xf32> to vector<1x128xf32>
    %130 = vector.extract_strided_slice %74 {offsets = [0, 0], sizes = [4, 128], strides = [1, 1]} : vector<8x128xf32> to vector<4x128xf32>
    %cst_40 = arith.constant dense<0.000000e+00> : vector<128xf32>
    %131 = vector.multi_reduction <add>, %130, %cst_40 [0] : vector<4x128xf32> to vector<128xf32>
    %132 = vector.shape_cast %131 : vector<128xf32> to vector<1x128xf32>
    %133 = vector.extract_strided_slice %71 {offsets = [4, 0], sizes = [4, 128], strides = [1, 1]} : vector<8x128xf32> to vector<4x128xf32>
    %cst_41 = arith.constant dense<0.000000e+00> : vector<128xf32>
    %134 = vector.multi_reduction <add>, %133, %cst_41 [0] : vector<4x128xf32> to vector<128xf32>
    %135 = vector.shape_cast %134 : vector<128xf32> to vector<1x128xf32>
    %136 = vector.extract_strided_slice %74 {offsets = [4, 0], sizes = [4, 128], strides = [1, 1]} : vector<8x128xf32> to vector<4x128xf32>
    %cst_42 = arith.constant dense<0.000000e+00> : vector<128xf32>
    %137 = vector.multi_reduction <add>, %136, %cst_42 [0] : vector<4x128xf32> to vector<128xf32>
    %138 = vector.shape_cast %137 : vector<128xf32> to vector<1x128xf32>
    %139 = tpu.concatenate %61, %67, %129, %135 in 0 : vector<1x128xf32>, vector<1x128xf32>, vector<1x128xf32>, vector<1x128xf32> -> vector<4x128xf32>
    %140 = tpu.concatenate %64, %70, %132, %138 in 0 : vector<1x128xf32>, vector<1x128xf32>, vector<1x128xf32>, vector<1x128xf32> -> vector<4x128xf32>
    %cst_43 = arith.constant 0.000000e+00 : f32
    %141 = vector.broadcast %cst_43 : f32 to vector<4x128xf32>
    %cst_44 = arith.constant 1.000000e+00 : f32
    %142 = vector.broadcast %cst_44 : f32 to vector<4x128xf32>
    %143 = arith.addf %139, %142 : vector<4x128xf32>
    %144 = arith.addf %139, %143 : vector<4x128xf32>
    %145 = arith.mulf %139, %143 : vector<4x128xf32>
    %146 = tpu.reciprocal %145 {approx = true} : vector<4x128xf32> -> vector<4x128xf32>
    %147 = arith.mulf %145, %146 : vector<4x128xf32>
    %cst_45 = arith.constant 2.000000e+00 : f32
    %148 = vector.broadcast %cst_45 : f32 to vector<4x128xf32>
    %149 = arith.subf %148, %147 : vector<4x128xf32>
    %150 = arith.mulf %146, %149 : vector<4x128xf32>
    %151 = arith.mulf %144, %150 : vector<4x128xf32>
    %152 = arith.addf %141, %151 : vector<4x128xf32>
    %cst_46 = arith.constant 1.000000e+00 : f32
    %153 = vector.broadcast %cst_46 : f32 to vector<4x128xf32>
    %154 = arith.addf %143, %153 : vector<4x128xf32>
    %cst_47 = arith.constant 1.000000e+00 : f32
    %155 = vector.broadcast %cst_47 : f32 to vector<4x128xf32>
    %156 = arith.addf %154, %155 : vector<4x128xf32>
    %157 = arith.addf %154, %156 : vector<4x128xf32>
    %158 = arith.mulf %154, %156 : vector<4x128xf32>
    %159 = tpu.reciprocal %158 {approx = true} : vector<4x128xf32> -> vector<4x128xf32>
    %160 = arith.mulf %158, %159 : vector<4x128xf32>
    %cst_48 = arith.constant 2.000000e+00 : f32
    %161 = vector.broadcast %cst_48 : f32 to vector<4x128xf32>
    %162 = arith.subf %161, %160 : vector<4x128xf32>
    %163 = arith.mulf %159, %162 : vector<4x128xf32>
    %164 = arith.mulf %157, %163 : vector<4x128xf32>
    %165 = arith.addf %152, %164 : vector<4x128xf32>
    %cst_49 = arith.constant 1.000000e+00 : f32
    %166 = vector.broadcast %cst_49 : f32 to vector<4x128xf32>
    %167 = arith.addf %156, %166 : vector<4x128xf32>
    %168 = tpu.reciprocal %167 {approx = true} : vector<4x128xf32> -> vector<4x128xf32>
    %169 = arith.mulf %167, %168 : vector<4x128xf32>
    %cst_50 = arith.constant 2.000000e+00 : f32
    %170 = vector.broadcast %cst_50 : f32 to vector<4x128xf32>
    %171 = arith.subf %170, %169 : vector<4x128xf32>
    %172 = arith.mulf %168, %171 : vector<4x128xf32>
    %173 = arith.mulf %172, %172 : vector<4x128xf32>
    %174 = math.log %167 : vector<4x128xf32>
    %cst_51 = arith.constant 5.000000e-01 : f32
    %175 = vector.broadcast %cst_51 : f32 to vector<4x128xf32>
    %176 = arith.mulf %175, %172 : vector<4x128xf32>
    %177 = arith.subf %174, %176 : vector<4x128xf32>
    %cst_52 = arith.constant 0.00416666688 : f32
    %178 = vector.broadcast %cst_52 : f32 to vector<4x128xf32>
    %179 = arith.mulf %173, %178 : vector<4x128xf32>
    %cst_53 = arith.constant 0.0039682542 : f32
    %180 = vector.broadcast %cst_53 : f32 to vector<4x128xf32>
    %181 = arith.subf %180, %179 : vector<4x128xf32>
    %182 = arith.mulf %173, %181 : vector<4x128xf32>
    %cst_54 = arith.constant 0.00833333377 : f32
    %183 = vector.broadcast %cst_54 : f32 to vector<4x128xf32>
    %184 = arith.subf %183, %182 : vector<4x128xf32>
    %185 = arith.mulf %173, %184 : vector<4x128xf32>
    %cst_55 = arith.constant 0.0833333358 : f32
    %186 = vector.broadcast %cst_55 : f32 to vector<4x128xf32>
    %187 = arith.subf %186, %185 : vector<4x128xf32>
    %188 = arith.mulf %173, %187 : vector<4x128xf32>
    %189 = arith.subf %177, %188 : vector<4x128xf32>
    %190 = arith.subf %189, %165 : vector<4x128xf32>
    %c0_56 = arith.constant 0 : index
    %c0_57 = arith.constant 0 : index
    %191 = vector.load %arg8[%c0_56, %c0_57] : memref<8x128xf32, #tpu.memory_space<vmem>>, vector<8x128xf32>
    %192 = arith.subf %191, %126 : vector<8x128xf32>
    %c0_58 = arith.constant 0 : index
    %c0_59 = arith.constant 0 : index
    %193 = vector.load %arg8[%c0_58, %c0_59] : memref<8x128xf32, #tpu.memory_space<vmem>>, vector<8x128xf32>
    tpu.vector_store %arg8[%c0_58, %c0_59], %192 {strides = array<i32>} : memref<8x128xf32, #tpu.memory_space<vmem>>, vector<8x128xf32>,
    %c0_60 = arith.constant 0 : index
    %c0_61 = arith.constant 0 : index
    %194 = vector.load %arg8[%c0_60, %c0_61] : memref<8x128xf32, #tpu.memory_space<vmem>>, vector<4x128xf32>
    %cst_62 = arith.constant 1.000000e-10 : f32
    %195 = vector.broadcast %cst_62 : f32 to vector<4x128xf32>
    %196 = arith.addf %190, %195 : vector<4x128xf32>
    %197 = arith.mulf %140, %196 : vector<4x128xf32>
    %198 = arith.addf %194, %197 : vector<4x128xf32>
    %c0_63 = arith.constant 0 : index
    %c0_64 = arith.constant 0 : index
    %199 = vector.load %arg8[%c0_63, %c0_64] : memref<8x128xf32, #tpu.memory_space<vmem>>, vector<4x128xf32>
    tpu.vector_store %arg8[%c0_63, %c0_64], %198 {strides = array<i32>} : memref<8x128xf32, #tpu.memory_space<vmem>>, vector<4x128xf32>,
    %c0_i32_65 = arith.constant 0 : i32
    %200 = arith.cmpi eq, %arg1, %c0_i32_65 : i32
    %201 = arith.extui %200 : i1 to i32
    %c0_i32_66 = arith.constant 0 : i32
    %202 = arith.cmpi ne, %201, %c0_i32_66 : i32
    scf.if %202 {
      %c0_67 = arith.constant 0 : index
      %c0_68 = arith.constant 0 : index
      %203 = vector.load %arg8[%c0_67, %c0_68] : memref<8x128xf32, #tpu.memory_space<vmem>>, vector<8x128xf32>
      %cst_69 = arith.constant dense<0.000000e+00> : vector<128xf32>
      %204 = vector.multi_reduction <add>, %203, %cst_69 [0] : vector<8x128xf32> to vector<128xf32>
      %205 = vector.shape_cast %204 : vector<128xf32> to vector<1x128xf32>
      %c0_70 = arith.constant 0 : index
      %c0_71 = arith.constant 0 : index
      %206 = vector.load %arg7[%c0_70, %c0_71] : memref<1x128xf32, #tpu.memory_space<vmem>>, vector<1x128xf32>
      tpu.vector_store %arg7[%c0_70, %c0_71], %205 {strides = array<i32>} : memref<1x128xf32, #tpu.memory_space<vmem>>, vector<1x128xf32>,
    } else {
    }
    return
  }
  func.func @transform_0(%arg0: i32, %arg1: i32) -> (i32, i32) {
    %c0_i32 = arith.constant 0 : i32
    %c0_i32_0 = arith.constant 0 : i32
    %c0_i32_1 = arith.constant 0 : i32
    return %c0_i32, %c0_i32_0 : i32, i32
  }
  func.func @transform_1(%arg0: i32, %arg1: i32) -> (i32, i32) {
    %c0_i32 = arith.constant 0 : i32
    return %arg1, %arg0 : i32, i32
  }
  func.func @transform_2(%arg0: i32, %arg1: i32) -> (i32, i32) {
    %c0_i32 = arith.constant 0 : i32
    return %arg1, %arg0 : i32, i32
  }
  func.func @transform_3(%arg0: i32, %arg1: i32) -> (i32, i32) {
    %c0_i32 = arith.constant 0 : i32
    return %arg1, %arg0 : i32, i32
  }
  func.func @transform_4(%arg0: i32, %arg1: i32) -> (i32, i32) {
    %c0_i32 = arith.constant 0 : i32
    return %arg1, %arg0 : i32, i32
  }
  func.func @transform_5(%arg0: i32, %arg1: i32) -> (i32, i32) {
    %c0_i32 = arith.constant 0 : i32
    %c0_i32_0 = arith.constant 0 : i32
    return %c0_i32, %arg0 : i32, i32
  }
}

</mosaic_0001>

<bundles_post_ra>
// kernel: tile.0
= control target key start
LH: loop header
LB: loop body
LE: loop exit
PB: predicated region body
PF: predicated region fallthrough
CT: control target
= control target key end

     0   :  { %s34_s8 = smov 125   ;;  %vm7_vm0 = vcmask 7168   ;;  %s35_s11 = smov 126   ;;  %s61_s0 = inlined_call_operand.vmem [shape: f32[2,4], index: 0, kind: input, shape index: {}]   ;;  %s62_s1 = inlined_call_operand.vmem [shape: f32[8,1], index: 1, kind: output, shape index: {}]  }
   0x1   :  { %v4_v0 = vld [vmem:[%s61_s0] sm:$0x3]  ;;  %s33_s0 = smov 127  }
   0x2   :  { %5 = vst [vmem:[#allocation0] sm:$0x3] %v4_v0 }
   0x9   :  { %v9_v1 = vld [vmem:[#allocation0] sm:$0x3]  }
   0xa   :  { %v21_v2 = vld [vmem:[#allocation0] sm:$0x3]   ;;  %10 = vrot.lane.b32.xlu0 %v9_v1, %s33_s0 }
   0xb   :  { %22 = vrot.lane.b32.xlu1 %v21_v2, %s34_s8  ;;  %v6_v3 = vld [vmem:[#allocation0] sm:$0x3]  }
   0xc   :  { %v15_v4 = vld [vmem:[#allocation0] sm:$0x3]   ;;  %8 = vst.msk [vmem:[%s62_s1] ss:$4 sm:$0x3] %vm7_vm0, %v6_v3  }
   0xe   :  { %16 = vrot.lane.b32.xlu0 %v15_v4, %s35_s11 }
  0x7c   :  { %v11_v5 = vpop.permute.xlu0 %10  }
  0x7d   :  { %v23_v6 = vpop.permute.xlu1 %22   ;;  %27 = vst.msk [vmem:[%s62_s1 + $0x1] ss:$4 sm:$0x3] %vm7_vm0, %v11_v5  }
  0x7e   :  { %29 = vst.msk [vmem:[%s62_s1 + $0x3] ss:$4 sm:$0x3] %vm7_vm0, %v23_v6  }
  0x80   :  { %v17_v7 = vpop.permute.xlu0 %16  }
  0x81   :  { %28 = vst.msk [vmem:[%s62_s1 + $0x2] ss:$4 sm:$0x3] %vm7_vm0, %v17_v7  }

// kernel: tile.8
= control target key start
LH: loop header
LB: loop body
LE: loop exit
PB: predicated region body
PF: predicated region fallthrough
CT: control target
= control target key end

     0   :  { %s22_s0 = inlined_call_operand.vmem [shape: f32[4], index: 0, kind: input, shape index: {}]   ;;  %s23_s1 = inlined_call_operand.vmem [shape: f32[2,4], index: 1, kind: output, shape index: {}]  }
   0x1   :  { %v4_v0 = vld [vmem:[%s22_s0] ss:$0 sm:$0xff] }
   0x2   :  { %5 = vst [vmem:[%s23_s1] sm:$0x3] %v4_v0 }

// kernel: uce_loss_forward.1
= control target key start
LH: loop header
LB: loop body
LE: loop exit
PB: predicated region body
PF: predicated region fallthrough
CT: control target
= control target key end

     0   :  { %s800_s18 = smov 0   ;;  %s802_s19 = smov 0   ;;  %s961_s0 = inlined_call_operand.vmem [shape: f32[8,1], index: 0, kind: input, shape index: {}]   ;;  %s962_s1 = inlined_call_operand.vmem [shape: f32[8,256], index: 1, kind: input, shape index: {}]   ;;  %s963_s2 = inlined_call_operand.vmem [shape: f32[8,256], index: 2, kind: input, shape index: {}]   ;;  %s964_s3 = inlined_call_operand.vmem [shape: f32[8,256], index: 3, kind: input, shape index: {}]   ;;  %s965_s4 = inlined_call_operand.vmem [shape: f32[8,256], index: 4, kind: input, shape index: {}]   ;;  %s966_s5 = inlined_call_operand.vmem [shape: f32[1,256], index: 5, kind: output, shape index: {}]  }
   0x1   :  { %s804_s20 = smov 0  }
   0x2 LB: > { %s27_s21 = sadd.s32 1, %s763_s19  ;;  %p687_p0 = scmp.ge.s32.totalorder %s767_s20, 1  ;;  %s767_s20 = sphi %s804_s20, %s15_s20   ;;  %s763_s19 = sphi %s802_s19, %s968_s19   ;;  %s759_s18 = sphi %s800_s18, %s967_s18  }
   0x3   : > { %p29_p1 = scmp.ge.s32.totalorder %s27_s21, 2  ;;  %p249_p2 = scmp.lt.s32.totalorder %s767_s20, 3 }
   0x5   : > { %s970_s21 = smov (%p29_p1, %s27_s21), 0  ;;  %p250_p3 = pnand %p687_p0, %p249_p2 }
   0x6   : > { %v342_v0 = vld [vmem:[%s961_s0] sm:$0xff] (!%p250_p3)  ;;  %v769_v1 = vmov (!%p250_p3), 0   ;;  %p304_p4 = scmp.lt.s32.totalorder (!%p250_p3), %s759_s18, 1  ;;  %vm390_vm0 = vcmask (!%p250_p3), 1043456   ;;  %vm502_vm1 = vcmask (!%p250_p3), 1040384   ;;  %vm504_vm2 = vcmask (!%p250_p3), 1041408  }
   0x7   : > { %253 = sbr.rel (%p250_p3) target bundleno = 181 (0xb5), region = 40  ;;  %720 = vset.pattern.permute.xlu0 (!%p250_p3), %v769_v1  ;;  %vm506_vm3 = vcmask (!%p250_p3), 1042432  }
   0x8   : > { %347 = vperm.xlu0 (!%p250_p3), %720, %v342_v0  }
   0xe   : > { %s972_s18 = smov (!%p304_p4, %s759_s18), 1 }
   0xf   : > { %s824_s24 = sshll.u32 %s972_s18, 3  ;;  %s336_s14 = scalar_lea.vmem %s966_s5, %s972_s18 }
  0x10   : > { %s309_s27 = scalar_lea.vmem %s962_s1, %s824_s24  ;;  %s325_s30 = scalar_lea.vmem %s964_s3, %s824_s24 }
  0x11   : > { %v830_v2 = vld [vmem:[%s309_s27] sm:$0xff]  ;;  %s317_s8 = scalar_lea.vmem %s963_s2, %s824_s24  ;;  %s333_s11 = scalar_lea.vmem %s965_s4, %s824_s24 }
  0x12   : > { %v406_v3 = vrot.slane %v830_v2, 4  ;;  %v837_v4 = vld [vmem:[%s325_s30] sm:$0xff]  ;;  %v391_v5 = vsel %vm390_vm0, %v830_v2, 0.0  ;;  %v847_v27 = vadd.f32 1.0, %v830_v2 }
  0x13   : > { %v483_v7 = vrot.slane %v837_v4, 4  ;;  %v392_v8 = vrot.slane %v391_v5, 4  ;;  %v468_v10 = vsel %vm390_vm0, %v837_v4, 0.0  ;;  %v850_v29 = vadd.f32 1.0, %v837_v4 }
  0x14   : > { %v408_v6 = vsel %vm390_vm0, %v406_v3, 0.0  ;;  %v469_v11 = vrot.slane %v468_v10, 4  ;;  %v853_v33 = vadd.f32 1.0, %v847_v27  ;;  %v353_v55 = vmul.f32 %v847_v27, %v830_v2 }
  0x15   : > { %v409_v9 = vrot.slane %v408_v6, 4  ;;  %v485_v12 = vsel %vm390_vm0, %v483_v7, 0.0  ;;  %v393_v13 = vadd.f32 %v392_v8, %v391_v5  ;;  %v856_v35 = vadd.f32 1.0, %v850_v29 }
  0x16   : > { %v486_v15 = vrot.slane %v485_v12, 4  ;;  %v470_v16 = vadd.f32 %v469_v11, %v468_v10  ;;  %v860_v38 = vadd.f32 1.0, %v853_v33  ;;  %v430_v57 = vmul.f32 %v850_v29, %v837_v4 }
  0x17   : > { %v410_v14 = vadd.f32 %v409_v9, %v408_v6  ;;  %v394_v17 = vrot.slane %v393_v13, 2  ;;  %v863_v40 = vadd.f32 1.0, %v856_v35 }
  0x18   : > { %v487_v19 = vadd.f32 %v486_v15, %v485_v12  ;;  %v471_v20 = vrot.slane %v470_v16, 2  ;;  %v370_v42 = vadd.f32 1.0, %v860_v38  ;;  %v363_v59 = vmul.f32 %v860_v38, %v853_v33 }
  0x19   : > { %v411_v18 = vrot.slane %v410_v14, 2  ;;  %v395_v21 = vadd.f32 %v394_v17, %v393_v13  ;;  %v447_v44 = vadd.f32 1.0, %v863_v40  ;;  %v440_v60 = vmul.f32 %v863_v40, %v856_v35 }
  0x1a   : > { %v488_v23 = vrot.slane %v487_v19, 2  ;;  %v472_v24 = vadd.f32 %v471_v20, %v470_v16  ;;  %721 = vrcp.f32 %v370_v42 }
  0x1b   : > { %v412_v22 = vadd.f32 %v411_v18, %v410_v14  ;;  %v396_v25 = vrot.slane %v395_v21, 1  ;;  %723 = vrcp.f32 %v447_v44 }
  0x1c   : > { %v489_v28 = vadd.f32 %v488_v23, %v487_v19  ;;  %v473_v30 = vrot.slane %v472_v24, 1 }
  0x1d   : > { %v413_v26 = vrot.slane %v412_v22, 1  ;;  %v397_v31 = vadd.f32 %v396_v25, %v395_v21 }
  0x1e   : > { %v490_v34 = vrot.slane %v489_v28, 1  ;;  %v474_v36 = vadd.f32 %v473_v30, %v472_v24 }
  0x1f   : > { %v414_v32 = vadd.f32 %v413_v26, %v412_v22 }
  0x20   : > { %v491_v39 = vadd.f32 %v490_v34, %v489_v28 }
  0x21   : > { %v503_v37 = vsel %vm502_vm1, %v397_v31, %v414_v32 }
  0x22   : > { %v505_v41 = vsel %vm504_vm2, %v503_v37, %v474_v36  ;;  %v352_v37 = vadd.f32 %v847_v27, %v830_v2 }
  0x23   : > { %v868_v43 = vsel %vm506_vm3, %v505_v41, %v491_v39  ;;  %v362_v39 = vadd.f32 %v860_v38, %v853_v33  ;;  %v429_v41 = vadd.f32 %v850_v29, %v837_v4 }
  0x24   : > { %v872_v45 = vadd.f32 1.0, %v868_v43  ;;  %v722_v48 = vpop.eup %721 }
  0x25   : > { %v724_v49 = vpop.eup %723  ;;  %v372_v51 = vmul.f32 %v722_v48, %v370_v42 }
  0x26   : > { %v875_v46 = vadd.f32 1.0, %v872_v45  ;;  %v449_v52 = vmul.f32 %v724_v49, %v447_v44  ;;  %v513_v9 = vmul.f32 %v872_v45, %v868_v43 }
  0x27   : > { %v373_v53 = vsub.f32 2.0, %v372_v51 }
  0x28   : > { %v878_v47 = vadd.f32 1.0, %v875_v46  ;;  %v450_v54 = vsub.f32 2.0, %v449_v52 }
  0x29   : > { %v374_v56 = vmul.f32 %v722_v48, %v373_v53 }
  0x2a   : > { %v881_v50 = vadd.f32 1.0, %v878_v47  ;;  %v451_v58 = vmul.f32 %v724_v49, %v450_v54  ;;  %v523_v11 = vmul.f32 %v878_v47, %v875_v46 }
  0x2b   : > { %v892_v62 = vmul.f32 %v374_v56, %v374_v56  ;;  %v378_v54 = vmul.f32 0.5, %v374_v56 }
  0x2c   : > { %725 = vrcp.f32 %v881_v50  ;;  %v894_v63 = vmul.f32 %v451_v58, %v451_v58  ;;  %v455_v27 = vmul.f32 0.5, %v451_v58 }
  0x2d   : > { %727 = vrcp.f32 %v353_v55  ;;  %v380_v1 = vmul.f32 0.004166667, %v892_v62 }
  0x2e   : > { %729 = vrcp.f32 %v430_v57  ;;  %v457_v3 = vmul.f32 0.004166667, %v894_v63 }
  0x2f   : > { %731 = vrcp.f32 %v363_v59  ;;  %v381_v6 = vsub.f32 0.003968254, %v380_v1 }
  0x30   : > { %733 = vrcp.f32 %v440_v60  ;;  %v458_v7 = vsub.f32 0.003968254, %v457_v3 }
  0x31   : > { %735 = vlog2.f32 %v370_v42  ;;  %v382_v15 = vmul.f32 %v381_v6, %v892_v62  ;;  %v439_v42 = vadd.f32 %v863_v40, %v856_v35 }
  0x32   : > { %737 = vlog2.f32 %v447_v44  ;;  %v459_v16 = vmul.f32 %v458_v7, %v894_v63 }
  0x33   : > { %739 = vrcp.f32 %v513_v9  ;;  %v383_v22 = vsub.f32 0.008333334, %v382_v15  ;;  %v522_v15 = vadd.f32 %v878_v47, %v875_v46 }
  0x34   : > { %741 = vrcp.f32 %v523_v11  ;;  %v460_v23 = vsub.f32 0.008333334, %v459_v16 }
  0x35   : > { %v384_v34 = vmul.f32 %v383_v22, %v892_v62  ;;  %743 = vlog2.f32 %v881_v50 }
  0x36   : > { %v726_v61 = vpop.eup %725  ;;  %v461_v36 = vmul.f32 %v460_v23, %v894_v63 }
  0x37   : > { %v532_v0 = vmul.f32 %v726_v61, %v881_v50  ;;  %v728_v8 = vpop.eup %727  ;;  %v385_v2 = vsub.f32 0.083333336, %v384_v34 }
  0x38   : > { %v730_v10 = vpop.eup %729  ;;  %v355_v17 = vmul.f32 %v728_v8, %v353_v55 }
  0x39   : > { %v533_v5 = vsub.f32 2.0, %v532_v0  ;;  %v732_v13 = vpop.eup %731  ;;  %v432_v18 = vmul.f32 %v730_v10, %v430_v57  ;;  %v386_v56 = vmul.f32 %v385_v2, %v892_v62 }
  0x3a   : > { %v734_v14 = vpop.eup %733  ;;  %v365_v20 = vmul.f32 %v732_v13, %v363_v59  ;;  %v356_v24 = vsub.f32 2.0, %v355_v17 }
  0x3b   : > { %v903_v12 = vmul.f32 %v726_v61, %v533_v5  ;;  %v442_v21 = vmul.f32 %v734_v14, %v440_v60  ;;  %v433_v25 = vsub.f32 2.0, %v432_v18  ;;  %v736_v28 = vpop.eup %735  ;;  %v462_v60 = vsub.f32 0.083333336, %v461_v36 }
  0x3c   : > { %v366_v30 = vsub.f32 2.0, %v365_v20  ;;  %v738_v32 = vpop.eup %737  ;;  %v357_v44 = vmul.f32 %v728_v8, %v356_v24  ;;  %v377_v48 = vmul.f32 0.6931472, %v736_v28 }
  0x3d   : > { %v909_v19 = vmul.f32 %v903_v12, %v903_v12  ;;  %v443_v31 = vsub.f32 2.0, %v442_v21  ;;  %v434_v49 = vmul.f32 %v730_v10, %v433_v25  ;;  %v740_v52 = vpop.eup %739  ;;  %v454_v57 = vmul.f32 0.6931472, %v738_v32 }
  0x3e   : > { %v367_v53 = vmul.f32 %v732_v13, %v366_v30  ;;  %v742_v59 = vpop.eup %741  ;;  %v358_v4 = vmul.f32 %v357_v44, %v352_v37  ;;  %v379_v38 = vsub.f32 %v377_v48, %v378_v54  ;;  %v515_v40 = vmul.f32 %v740_v52, %v513_v9 }
  0x3f   : > { %v540_v26 = vmul.f32 0.004166667, %v909_v19  ;;  %v444_v55 = vmul.f32 %v734_v14, %v443_v31  ;;  %v435_v29 = vmul.f32 %v434_v49, %v429_v41  ;;  %v525_v61 = vmul.f32 %v742_v59, %v523_v11  ;;  %v744_v62 = vpop.eup %743  ;;  %v344_v11 = vld [vmem:[%s317_s8] sm:$0xff] }
  0x40   : > { %v368_v35 = vmul.f32 %v367_v53, %v362_v39  ;;  %v456_v1 = vsub.f32 %v454_v57, %v455_v27  ;;  %v463_v3 = vmul.f32 %v462_v60, %v894_v63  ;;  %v516_v5 = vsub.f32 2.0, %v515_v40  ;;  %v426_v63 = vld [vmem:[%s333_s11] sm:$0xff] }
  0x41   : > { %v541_v51 = vsub.f32 0.003968254, %v540_v26  ;;  %v445_v0 = vmul.f32 %v444_v55, %v439_v42  ;;  %v526_v6 = vsub.f32 2.0, %v525_v61  ;;  %v387_v7 = vsub.f32 %v379_v38, %v386_v56 }
  0x42   : > { %v369_v50 = vadd.f32 %v368_v35, %v358_v4  ;;  %v464_v9 = vsub.f32 %v456_v1, %v463_v3  ;;  %v512_v13 = vadd.f32 %v872_v45, %v868_v43  ;;  %v517_v14 = vmul.f32 %v740_v52, %v516_v5 }
  0x43   : > { %v542_v33 = vmul.f32 %v541_v51, %v909_v19  ;;  %v446_v8 = vadd.f32 %v445_v0, %v435_v29  ;;  %v527_v16 = vmul.f32 %v742_v59, %v526_v6  ;;  %v537_v21 = vmul.f32 0.6931472, %v744_v62 }
  0x44   : > { %v388_v17 = vsub.f32 %v387_v7, %v369_v50  ;;  %v538_v22 = vmul.f32 0.5, %v903_v12  ;;  %v518_v26 = vmul.f32 %v517_v14, %v512_v13 }
  0x45   : > { %v543_v58 = vsub.f32 0.008333334, %v542_v33  ;;  %v465_v18 = vsub.f32 %v464_v9, %v446_v8  ;;  %v528_v28 = vmul.f32 %v527_v16, %v522_v15 }
  0x46   : > { %v539_v34 = vsub.f32 %v537_v21, %v538_v22 }
  0x47   : > { %v544_v10 = vmul.f32 %v543_v58, %v909_v19  ;;  %v529_v57 = vadd.f32 %v528_v28, %v518_v26 }
  0x49   : > { %v545_v25 = vsub.f32 0.083333336, %v544_v10 }
  0x4b   : > { %v546_v12 = vmul.f32 %v545_v25, %v909_v19 }
  0x4d   : > { %v547_v59 = vsub.f32 %v539_v34, %v546_v12 }
  0x4f   : > { %v548_v38 = vsub.f32 %v547_v59, %v529_v57 }
  0x51   : > { %v553_v3 = vadd.f32 1e-10, %v548_v38 }
  0x87   : > { %v348_v20 = vpop.permute.xlu0 %347 }
  0x88   : > { %v350_v23 = vmul.f32 %v348_v20, %v344_v11  ;;  %v427_v24 = vmul.f32 %v426_v63, %v348_v20 }
  0x8a   : > { %v389_v30 = vmul.f32 %v388_v17, %v350_v23  ;;  %v398_v31 = vsel %vm390_vm0, %v350_v23, 0.0  ;;  %v416_v43 = vrot.slane %v350_v23, 4  ;;  %v466_v45 = vmul.f32 %v465_v18, %v427_v24 }
  0x8b   : > { %v399_v32 = vrot.slane %v398_v31, 4  ;;  %v475_v46 = vsel %vm390_vm0, %v427_v24, 0.0  ;;  %v493_v47 = vrot.slane %v427_v24, 4 }
  0x8c   : > { %v418_v36 = vsel %vm390_vm0, %v416_v43, 0.0  ;;  %v467_v37 = vadd.f32 %v466_v45, %v389_v30  ;;  %v476_v39 = vrot.slane %v475_v46, 4 }
  0x8d   : > { %v400_v41 = vadd.f32 %v399_v32, %v398_v31  ;;  %v419_v42 = vrot.slane %v418_v36, 4  ;;  %v495_v44 = vsel %vm390_vm0, %v493_v47, 0.0 }
  0x8e   : > { %v477_v48 = vadd.f32 %v476_v39, %v475_v46  ;;  %v496_v49 = vrot.slane %v495_v44, 4  ;;  %v550_v51 = vsub.f32 0.0, %v467_v37 }
  0x8f   : > { %v401_v52 = vrot.slane %v400_v41, 2  ;;  %v420_v53 = vadd.f32 %v419_v42, %v418_v36 }
  0x90   : > { %v478_v54 = vrot.slane %v477_v48, 2  ;;  %v497_v55 = vadd.f32 %v496_v49, %v495_v44  ;;  %551 = vst [vmem:[#allocation2] sm:$0xff] %v550_v51 }
  0x91   : > { %v402_v2 = vadd.f32 %v401_v52, %v400_v41  ;;  %v421_v27 = vrot.slane %v420_v53, 2 }
  0x92   : > { %v479_v60 = vadd.f32 %v478_v54, %v477_v48  ;;  %v498_v4 = vrot.slane %v497_v55, 2 }
  0x93   : > { %v403_v29 = vrot.slane %v402_v2, 1  ;;  %v422_v19 = vadd.f32 %v421_v27, %v420_v53 }
  0x94   : > { %v480_v33 = vrot.slane %v479_v60, 1  ;;  %v499_v35 = vadd.f32 %v498_v4, %v497_v55 }
  0x95   : > { %v423_v40 = vrot.slane %v422_v19, 1  ;;  %v404_v56 = vadd.f32 %v403_v29, %v402_v2 }
  0x96   : > { %v500_v61 = vrot.slane %v499_v35, 1  ;;  %v481_v1 = vadd.f32 %v480_v33, %v479_v60 }
  0x97   : > { %v424_v0 = vadd.f32 %v423_v40, %v422_v19  ;;  %v552_v8 = vld [vmem:[#allocation2] sm:$0xf] }
  0x98   : > { %v501_v58 = vadd.f32 %v500_v61, %v499_v35 }
  0x99   : > { %v508_v5 = vsel %vm502_vm1, %v404_v56, %v424_v0 }
  0x9a   : > { %v509_v6 = vsel %vm504_vm2, %v508_v5, %v481_v1 }
  0x9b   : > { %v510_v50 = vsel %vm506_vm3, %v509_v6, %v501_v58 }
  0x9c   : > { %v554_v7 = vmul.f32 %v553_v3, %v510_v50 }
  0x9e   : > { %v555_v9 = vadd.f32 %v554_v7, %v552_v8 }
  0xa0   : > { %556 = vst [vmem:[#allocation2] sm:$0xf] %v555_v9 }
  0xa7   : > { %v560_v62 = vld [vmem:[#allocation2] sm:$0xff] }
  0xa8   : > { %v561_v10 = vrot.slane %v560_v62, 4 }
  0xaa   : > { %v562_v11 = vadd.f32 %v561_v10, %v560_v62 }
  0xac   : > { %v563_v63 = vrot.slane %v562_v11, 2 }
  0xae   : > { %v564_v13 = vadd.f32 %v563_v63, %v562_v11 }
  0xb0   : > { %v565_v14 = vrot.slane %v564_v13, 1 }
  0xb2   : > { %v566_v15 = vadd.f32 %v565_v14, %v564_v13 }
  0xb4   : > { %567 = vst [vmem:[%s336_s14] sm:$0x1] %v566_v15 }
  0xb5 PF: > { %s15_s20 = sadd.s32 1, %s767_s20   ;;  %s967_s18 = smov %s763_s19 }
  0xb6   : > { %p12_p5 = scmp.ge.s32.totalorder %s15_s20, 4   ;;  %s968_s19 = smov %s970_s21 }
  0xb8   :  { %14 = sbr.rel (!%p12_p5) target bundleno = 2 (0x2), region = 87 }

</bundles_post_ra>
